<compile_context>
chip_gen: v6e
topology: v6e:2x2x1
jax: 0.10.0
libtpu: 0.0.40
codegen_flags: <defaults>
</compile_context>

<pallas_src>
import jax
import jax.numpy as jnp
from jax.experimental import pallas as pl
from jax.experimental.pallas import tpu as pltpu

_LANE = 128
_SUBLANE = 8
_SLAB = _SUBLANE * _LANE  # 1024: batch granularity of the (8, lanes) layout

# Below this batch the fixed pallas_call + relayout cost dwarfs the useful work:
# let XLA fuse relu(x @ W.T + b) into the producer of x instead.
_MIN_PALLAS_BATCH = 4096

# Single-block ceiling and grid tile, in lanes.  Each lane carries 8 batch rows:
#   * one grid step at _LANE_TILE=4096 moves (F+1)*8*4096*4 B = 384 KiB (f32, F=2)
#   * the largest single block (16384 lanes = 131072 rows) is 1.5 MiB, i.e.
#     3 MiB double-buffered -- far under v5e's 16 MiB scoped-VMEM default and
#     v7x's 64 MiB physical VMEM.
# _LANE_TILE=4096 bounds tail waste to <~25% of one extra tile and gives v7x's
# two TensorCores >=4 grid steps as soon as the tiled path kicks in.
_MAX_SINGLE_BLOCK_LANES = 16384
_LANE_TILE = 4096


def _round_up(n, m):
    return ((n + m - 1) // m) * m


def _linear_relu_kernel(x_ref, w_ref, b_ref, o_ref):
    # x_ref: (F, 8, T) f32 VMEM -- batch on (sublane, lane); all 8 sublanes used
    # w_ref: (F,)  f32 SMEM     -- scalar reads, broadcast on the VPU
    # b_ref: (1,)  f32 SMEM
    # o_ref: (8, T) f32 VMEM    -- full-width, unmasked stores
    F = x_ref.shape[0]
    acc = x_ref[0] * w_ref[0]
    for f in range(1, F):  # F is tiny & static -> unrolled VPU mul/add chain
        acc = acc + x_ref[f] * w_ref[f]
    o_ref[...] = jnp.maximum(acc + b_ref[0], 0.0)


def ann_stlf_greek_forward(
    x,
    weight,
    bias,
    *,
    min_pallas_batch=_MIN_PALLAS_BATCH,
    max_single_block_lanes=_MAX_SINGLE_BLOCK_LANES,
    lane_tile=_LANE_TILE,
):
    """relu(x @ W.T + b).  x: (B, F), weight: (1, F), bias: (1,) -> (B, 1) f32."""
    B, F = x.shape
    x = x.astype(jnp.float32)
    w_flat = weight.reshape(F).astype(jnp.float32)
    b_flat = bias.reshape(1).astype(jnp.float32)

    # Small-batch path: a standalone kernel is pure overhead here on every TPU
    # generation -- let XLA fuse the epilogue into x's producer.
    if B < min_pallas_batch:
        return jnp.maximum(x @ w_flat[:, None] + b_flat[None, :], 0.0)

    assert lane_tile % _LANE == 0 and max_single_block_lanes % _LANE == 0

    # Batch onto the full (8 sublane, 128 lane) footprint: pad B to a multiple
    # of 1024 and view x.T as (F, 8, L).  Row-major reshape keeps batch order:
    # slab[f, s, l] == x[s*L + l, f], so out.reshape(Bp)[:B] recovers it.
    Bp = _round_up(B, _SLAB)
    L = Bp // _SUBLANE
    if L > max_single_block_lanes:
        Tl = lane_tile
        L = _round_up(L, Tl)
        Bp = _SUBLANE * L
    else:
        Tl = L

    # TODO(synk): one extra HBM pass over x; push this layout upstream so the
    # producer hands x already as the (F, 8, L) slab (optionally bf16).
    xt = x.T
    if Bp != B:
        xt = jnp.pad(xt, ((0, 0), (0, Bp - B)))
    xs = xt.reshape(F, _SUBLANE, L)

    # Explicit scoped-VMEM guard (real usage, double-buffered in + out blocks).
    block_bytes = (F + 1) * _SUBLANE * Tl * 4
    compiler_params = pltpu.CompilerParams(
        dimension_semantics=("parallel",),  # megacore / v7x: 2 TCs split the grid
        vmem_limit_bytes=int(max(4 * block_bytes + (4 << 20), 16 << 20)),
    )

    out = pl.pallas_call(
        _linear_relu_kernel,
        out_shape=jax.ShapeDtypeStruct((_SUBLANE, L), jnp.float32),
        grid=(L // Tl,),
        in_specs=[
            pl.BlockSpec((F, _SUBLANE, Tl), lambda i: (0, 0, i)),  # x slab (VMEM)
            pl.BlockSpec(memory_space=pltpu.MemorySpace.SMEM),     # weight scalars
            pl.BlockSpec(memory_space=pltpu.MemorySpace.SMEM),     # bias scalar
        ],
        out_specs=pl.BlockSpec((_SUBLANE, Tl), lambda i: (0, i)),
        compiler_params=compiler_params,
    )(xs, w_flat, b_flat)

    # TODO(synk): if the consumer accepts a flat (B,) vector, skip this final
    # (B, 1) reshape -- a (B, 1) f32 array is ~128x lane-padded in HBM.
    return out.reshape(Bp)[:B].reshape(B, 1)


def reference_forward(x, weight, bias):
    return jnp.maximum(x @ weight.T + bias[None, :], 0.0)


if __name__ == "__main__":
    key = jax.random.PRNGKey(0)
    kw, kb, k_small, k_big = jax.random.split(key, 4)

    in_size = 2  # (hourly linear trend, temperature)

    # PyTorch nn.Linear default init: U(-1/sqrt(fan_in), 1/sqrt(fan_in))
    bound = 1.0 / (in_size ** 0.5)
    weight = jax.random.uniform(kw, (1, in_size), jnp.float32, -bound, bound)
    bias = jax.random.uniform(kb, (1,), jnp.float32, -bound, bound)

    # 1) Production-like tiny batch -> XLA-fused fallback path.
    x_small = jax.random.normal(k_small, (8, in_size), jnp.float32)
    out_small = ann_stlf_greek_forward(x_small, weight, bias)
    jax.block_until_ready(out_small)
    ref_small = reference_forward(x_small, weight, bias)
    assert out_small.shape == (8, 1)
    assert jnp.allclose(out_small, ref_small, atol=1e-5, rtol=1e-5)

    # 2) Non-multiple-of-1024 batch -> Pallas single-block path
    #    (pad + (F, 8, L) slab, lane-dense (8, L) output).
    x_big = jax.random.normal(k_big, (4300, in_size), jnp.float32)
    out_big = ann_stlf_greek_forward(x_big, weight, bias)
    jax.block_until_ready(out_big)
    ref_big = reference_forward(x_big, weight, bias)
    assert out_big.shape == (4300, 1)
    assert jnp.allclose(out_big, ref_big, atol=1e-5, rtol=1e-5)

    # 3) Same batch, forced onto the tiled grid path (small tiles) to exercise
    #    the multi-step pipeline, tail rounding and the "parallel" grid.
    out_grid = ann_stlf_greek_forward(
        x_big, weight, bias, max_single_block_lanes=256, lane_tile=128
    )
    jax.block_until_ready(out_grid)
    assert out_grid.shape == (4300, 1)
    assert jnp.allclose(out_grid, ref_big, atol=1e-5, rtol=1e-5)

    print("KERNEL_OK")
</pallas_src>

<mosaic_0001>
module attributes {stable_mosaic.version = 11 : i64} {
  func.func @_linear_relu_kernel(%arg0: i32, %arg1: memref<2x8x640xf32, #tpu.memory_space<vmem>>, %arg2: memref<2xf32, #tpu.memory_space<smem>>, %arg3: memref<1xf32, #tpu.memory_space<smem>>, %arg4: memref<8x640xf32, #tpu.memory_space<vmem>>) attributes {dimension_semantics = [#tpu.dimension_semantics<parallel>], iteration_bounds = array<i64: 1>, scalar_prefetch = 0 : i64, scratch_operands = 0 : i64, tpu.core_type = #tpu.core_type<tc>, window_params = [{transform_indices = @transform_0, window_bounds = array<i64: 2, 8, 640>}, {transform_indices = @transform_1, window_bounds = array<i64: 2>}, {transform_indices = @transform_2, window_bounds = array<i64: 1>}, {transform_indices = @transform_3, window_bounds = array<i64: 8, 640>}]} {
    %c0 = arith.constant 0 : index
    %c0_0 = arith.constant 0 : index
    %c0_1 = arith.constant 0 : index
    %0 = vector.load %arg1[%c0, %c0_0, %c0_1] : memref<2x8x640xf32, #tpu.memory_space<vmem>>, vector<1x8x640xf32>
    %1 = vector.shape_cast %0 : vector<1x8x640xf32> to vector<8x640xf32>
    %c0_2 = arith.constant 0 : index
    %2 = memref.load %arg2[%c0_2] : memref<2xf32, #tpu.memory_space<smem>>
    %3 = vector.broadcast %2 : f32 to vector<8x640xf32>
    %4 = arith.mulf %1, %3 : vector<8x640xf32>
    %c1 = arith.constant 1 : index
    %c0_3 = arith.constant 0 : index
    %c0_4 = arith.constant 0 : index
    %5 = vector.load %arg1[%c1, %c0_3, %c0_4] : memref<2x8x640xf32, #tpu.memory_space<vmem>>, vector<1x8x640xf32>
    %6 = vector.shape_cast %5 : vector<1x8x640xf32> to vector<8x640xf32>
    %c1_5 = arith.constant 1 : index
    %7 = memref.load %arg2[%c1_5] : memref<2xf32, #tpu.memory_space<smem>>
    %8 = vector.broadcast %7 : f32 to vector<8x640xf32>
    %9 = arith.mulf %6, %8 : vector<8x640xf32>
    %10 = arith.addf %4, %9 : vector<8x640xf32>
    %c0_6 = arith.constant 0 : index
    %11 = memref.load %arg3[%c0_6] : memref<1xf32, #tpu.memory_space<smem>>
    %12 = vector.broadcast %11 : f32 to vector<8x640xf32>
    %13 = arith.addf %10, %12 : vector<8x640xf32>
    %cst = arith.constant 0.000000e+00 : f32
    %14 = vector.broadcast %cst : f32 to vector<8x640xf32>
    %15 = arith.maximumf %13, %14 : vector<8x640xf32>
    %c0_7 = arith.constant 0 : index
    %c0_8 = arith.constant 0 : index
    %16 = vector.load %arg4[%c0_7, %c0_8] : memref<8x640xf32, #tpu.memory_space<vmem>>, vector<8x640xf32>
    tpu.vector_store %arg4[%c0_7, %c0_8], %15 {strides = array<i32>} : memref<8x640xf32, #tpu.memory_space<vmem>>, vector<8x640xf32>,
    return
  }
  func.func @transform_0(%arg0: i32) -> (i32, i32, i32) {
    %c0_i32 = arith.constant 0 : i32
    %c0_i32_0 = arith.constant 0 : i32
    %c0_i32_1 = arith.constant 0 : i32
    return %c0_i32, %c0_i32_0, %arg0 : i32, i32, i32
  }
  func.func @transform_1(%arg0: i32) -> i32 {
    %c0_i32 = arith.constant 0 : i32
    %c0_i32_0 = arith.constant 0 : i32
    return %c0_i32 : i32
  }
  func.func @transform_2(%arg0: i32) -> i32 {
    %c0_i32 = arith.constant 0 : i32
    %c0_i32_0 = arith.constant 0 : i32
    return %c0_i32 : i32
  }
  func.func @transform_3(%arg0: i32) -> (i32, i32) {
    %c0_i32 = arith.constant 0 : i32
    %c0_i32_0 = arith.constant 0 : i32
    return %c0_i32, %arg0 : i32, i32
  }
}

</mosaic_0001>

<bundles_post_ra>
// kernel: tpu_custom_call.1
= control target key start
LH: loop header
LB: loop body
LE: loop exit
PB: predicated region body
PF: predicated region fallthrough
CT: control target
= control target key end

     0   :  { %9 = vsyncpa [#allocation4], 0  ;;  %s207_s0 = inlined_call_operand.hbm [shape: f32[2,8,640], index: 0, kind: input, shape index: {}]   ;;  %s208_s1 = inlined_call_operand.vmem [shape: f32[2], index: 1, kind: input, shape index: {}]   ;;  %s209_s2 = inlined_call_operand.<no memory space> [shape: f32[1], index: 2, kind: input, shape index: {}]   ;;  %s210_s3 = inlined_call_operand.hbm [shape: f32[8,640], index: 3, kind: output, shape index: {}]  }
   0x1   :  { %10 = vsyncpa [#allocation6], 0 }
   0x2   :  { %11 = vsyncpa [#allocation5], 0  ;;  %s170_s12 = smov [#allocation3]   ;;  %s30_s16 = sshll.u32 %s208_s1, 4  ;;  %s31_s16 = int_to_ptr.vmem [resolvable:$true] %s30_s16 }
   0x3   :  { %s17_s13 = sshll.u32 %s170_s12, 4  ;;  %s18_s13 = int_to_ptr.vmem [resolvable:$true] %s17_s13 }
   0x4   :  { %s120_s17 = scalar_lea.vmem %s18_s13, 1280  ;;  %p125_p1 = scmp.lt.s32.totalorder %s18_s13, %s18_s13 }
   0x5   :  { %p121_p0 = scmp.ne.s32.totalorder %s18_s13, %s120_s17  ;;  %p126_p2 = scmp.lt.s32.totalorder %s120_s17, %s120_s17 }
   0x7   :  { %p127_p3 = por %p126_p2, %p125_p1 }
   0x9   :  { %p128_p4 = pnand %p127_p3, %p121_p0 }
   0xb   :  { %131 = shalt.err (!%p128_p4)
}
   0xc   :  { %s171_s18 = smov 640   ;;  %s172_s19 = smov 40  }
   0xd   :  { %23 = dma.hbm_to_vmem [thread:$0]  %s207_s0, 1280, %s18_s13, [#allocation4], %s171_s18, %s171_s18, %s172_s19  }
   0xe   :  { %s132_s22 = scalar_lea.vmem %s31_s16, 16  ;;  %p137_p6 = scmp.lt.s32.totalorder %s31_s16, %s31_s16 }
   0xf   :  { %p133_p5 = scmp.ne.s32.totalorder %s31_s16, %s132_s22  ;;  %p138_p7 = scmp.lt.s32.totalorder %s132_s22, %s132_s22 }
  0x11   :  { %p139_p8 = por %p138_p7, %p137_p6 }
  0x13   :  { %p140_p9 = pnand %p139_p8, %p133_p5 }
  0x15   :  { %143 = shalt.err (!%p140_p9)
}
  0x16   :  { %s173_s1 = smov [#allocation7]  }
  0x17   :  { %33 = dma.vmem_to_smem %s31_s16, 16, %s173_s1, [#allocation6]  }
  0x18   :  { %164 = dma.done.wait [#allocation4], 1280  }
  0x19   :  { %165 = vsyncadd [#allocation4], 4294966016 }
  0x1a   :  { %166 = dma.done.wait [#allocation6], 16  }
  0x1b   :  { %167 = vsyncadd [#allocation6], 4294967280 }
  0x1c   :  { %42 = sfence }
  0x1d   :  { %s48_s23 = sld [smem:[#allocation7]]  ;;  %v43_v0 = vld [vmem:[#allocation3] sm:$0xff]  ;;  %v56_v1 = vld [vmem:[#allocation3 + $0x28] sm:$0xff]  ;;  %v45_v3 = vld [vmem:[#allocation3 + $0x10] sm:$0xff]  ;;  %v74_v19 = vstv %s209_s2  ;;  %s174_s26 = smov [#allocation8]  }
  0x1e   :  { %s106_s24 = sld [smem:[#allocation7 + $0x1]]  ;;  %v44_v2 = vld [vmem:[#allocation3 + $0x8] sm:$0xff]  ;;  %v57_v4 = vld [vmem:[#allocation3 + $0x30] sm:$0xff]  ;;  %v58_v5 = vld [vmem:[#allocation3 + $0x38] sm:$0xff]  ;;  %s96_s27 = sshll.u32 %s174_s26, 4  ;;  %s97_s27 = int_to_ptr.vmem [resolvable:$true] %s96_s27 }
  0x1f   :  { %v46_v6 = vld [vmem:[#allocation3 + $0x18] sm:$0xff]  ;;  %v59_v8 = vld [vmem:[#allocation3 + $0x40] sm:$0xff]  ;;  %v60_v10 = vld [vmem:[#allocation3 + $0x48] sm:$0xff]  ;;  %s144_s2 = scalar_lea.vmem %s97_s27, 640  ;;  %p149_p11 = scmp.lt.s32.totalorder %s97_s27, %s97_s27 }
  0x20   :  { %v47_v9 = vld [vmem:[#allocation3 + $0x20] sm:$0xff]  ;;  %p145_p10 = scmp.ne.s32.totalorder %s97_s27, %s144_s2  ;;  %p150_p12 = scmp.lt.s32.totalorder %s144_s2, %s144_s2 }
  0x22   :  { %p151_p13 = por %p150_p12, %p149_p11 }
  0x23   :  { %v49_v7 = vstv %s48_s23 }
  0x24   :  { %v50_v11 = vmul.f32 %v49_v7, %v43_v0  ;;  %v62_v12 = vstv %s106_s24  ;;  %v51_v13 = vmul.f32 %v49_v7, %v44_v2  ;;  %v52_v14 = vmul.f32 %v49_v7, %v45_v3  ;;  %p152_p0 = pnand %p151_p13, %p145_p10 }
  0x25   :  { %v63_v15 = vmul.f32 %v62_v12, %v56_v1  ;;  %v64_v16 = vmul.f32 %v62_v12, %v57_v4  ;;  %v65_v17 = vmul.f32 %v62_v12, %v58_v5  ;;  %v53_v18 = vmul.f32 %v49_v7, %v46_v6 }
  0x26   :  { %v66_v20 = vmul.f32 %v62_v12, %v59_v8  ;;  %v54_v21 = vmul.f32 %v49_v7, %v47_v9  ;;  %v67_v22 = vmul.f32 %v62_v12, %v60_v10 }
  0x27   :  { %v68_v23 = vadd.f32 %v63_v15, %v50_v11  ;;  %v69_v24 = vadd.f32 %v64_v16, %v51_v13  ;;  %v70_v25 = vadd.f32 %v65_v17, %v52_v14 }
  0x28   :  { %v71_v26 = vadd.f32 %v66_v20, %v53_v18  ;;  %v72_v27 = vadd.f32 %v67_v22, %v54_v21 }
  0x29   :  { %v75_v28 = vadd.f32 %v74_v19, %v68_v23  ;;  %v76_v29 = vadd.f32 %v74_v19, %v69_v24  ;;  %v77_v30 = vadd.f32 %v74_v19, %v70_v25 }
  0x2a   :  { %v78_v31 = vadd.f32 %v74_v19, %v71_v26  ;;  %v79_v32 = vadd.f32 %v74_v19, %v72_v27 }
  0x2b   :  { %v80_v33 = vmax.f32 %v75_v28, 0.0  ;;  %v81_v34 = vmax.f32 %v76_v29, 0.0  ;;  %v82_v35 = vmax.f32 %v77_v30, 0.0 }
  0x2c   :  { %v83_v36 = vmax.f32 %v78_v31, 0.0  ;;  %v84_v37 = vmax.f32 %v79_v32, 0.0 }
  0x2d   :  { %85 = vst [vmem:[#allocation8] sm:$0xff] %v80_v33  ;;  %86 = vst [vmem:[#allocation8 + $0x8] sm:$0xff] %v81_v34 }
  0x2e   :  { %87 = vst [vmem:[#allocation8 + $0x10] sm:$0xff] %v82_v35  ;;  %88 = vst [vmem:[#allocation8 + $0x18] sm:$0xff] %v83_v36 }
  0x2f   :  { %89 = vst [vmem:[#allocation8 + $0x20] sm:$0xff] %v84_v37 }
  0x30   :  { %155 = shalt.err (!%p152_p0)
}
  0x31   :  { %99 = dma.vmem_to_hbm [thread:$0]  %s97_s27, 640, %s210_s3, [#allocation5]  }
  0x32   :  { %168 = dma.done.wait [#allocation5], 640  }
  0x33   :  { %169 = vsyncadd [#allocation5], 4294966656 }
  0x34   :  { %103 = vsyncpa [#allocation4], 1 }
  0x35   :  { %104 = vsyncpa [#allocation5], 1 }
  0x36   :  { %105 = vsyncpa [#allocation6], 1 }

</bundles_post_ra>
